<compile_context>
chip_gen: v5e
topology: v5e:2x2
jax: 0.10.0
libtpu: 0.0.40
codegen_flags: <defaults>
</compile_context>

<pallas_src>
import jax
import jax.numpy as jnp
from jax.experimental import pallas as pl
from jax.experimental.pallas import tpu as pltpu


def _fused_kernel(x_ref, wf_ref, bf_ref, out_ref):
    # x_ref : (rows, D)        flattened (B*S, D) inputs, lane axis = D
    # wf_ref: (D, 2*dout)      fused weight  [ W1ᵀW3ᵀ | (2W2)ᵀW3ᵀ ]
    # bf_ref: (1, 2*dout)      fused bias    [ b1W3ᵀ+b3 | b2W3ᵀ+b3 ]
    # out_ref:(rows, 2*dout)   one contiguous aligned store
    _, d = x_ref.shape
    x = x_ref[...].astype(jnp.float32)
    wf = wf_ref[...].astype(jnp.float32)

    res = jnp.broadcast_to(bf_ref[...].astype(jnp.float32), out_ref.shape)
    if d <= 8:
        # K is tiny: keep the contraction off the MXU — D broadcast-FMAs (VPU).
        for k in range(d):
            res = res + x[:, k:k + 1] * wf[k:k + 1, :]
    else:
        res = res + jnp.dot(x, wf, preferred_element_type=jnp.float32)

    out_ref[...] = res.astype(out_ref.dtype)


def model_forward(x, w1, b1, w2, b2, w3, b3):
    """x: (B, S, D); w_i: torch-style (D_out, D_in); b_i: (D_out,)."""
    B, S, D = x.shape
    dout = w3.shape[0]

    # --- one-time constant prep (outside the hot kernel) -------------------
    # Fold linear3 into linear1 / linear2 and fold the `x + x` into linear2.
    w3t = jnp.transpose(w3)                       # (d3_in, dout)
    w_top = jnp.transpose(w1) @ w3t               # (D, dout)   x-path via linear1
    w_bot = jnp.transpose(2.0 * w2) @ w3t         # (D, dout)   (2x)-path via linear2
    b_top = b1 @ w3t + b3                         # (dout,)
    b_bot = b2 @ w3t + b3                         # (dout,)
    w_fused = jnp.concatenate([w_top, w_bot], axis=1)                 # (D, 2*dout)
    b_fused = jnp.concatenate([b_top, b_bot]).reshape(1, 2 * dout)    # (1, 2*dout)

    # Flatten batch+seq onto the sublane axis in the wrapper (contiguous view).
    rows = B * S
    x2d = x.reshape(rows, D)

    itemsize = jnp.dtype(x.dtype).itemsize
    cost = pl.CostEstimate(
        flops=2 * rows * D * 2 * dout,
        transcendentals=0,
        bytes_accessed=(x2d.size + w_fused.size + b_fused.size
                        + rows * 2 * dout) * itemsize,
    )

    fused = pl.pallas_call(
        _fused_kernel,
        out_shape=jax.ShapeDtypeStruct((rows, 2 * dout), x.dtype),
        grid_spec=pl.GridSpec(
            grid=(1,),  # whole problem in one step: no pipeline / cross-TC overhead
            in_specs=[
                pl.BlockSpec((rows, D), lambda i: (0, 0)),          # x (flattened)
                pl.BlockSpec((D, 2 * dout), lambda i: (0, 0)),      # fused weight
                pl.BlockSpec((1, 2 * dout), lambda i: (0, 0)),      # fused bias
            ],
            out_specs=pl.BlockSpec((rows, 2 * dout), lambda i: (0, 0)),
        ),
        compiler_params=pltpu.CompilerParams(
            dimension_semantics=("arbitrary",),   # never shard trivial work on v7x
        ),
        cost_estimate=cost,
    )(x2d, w_fused, b_fused)

    # (rows, 2*dout) -> (B, S, 2, dout) -> (B, 2, S, dout) -> (B, 2S, dout)
    # top half (linear1 path) lands in rows [:S], bottom half (linear2 path)
    # in rows [S:], exactly matching cat((v1, v3), dim=1) @ W3ᵀ + b3.
    out = fused.reshape(B, S, 2, dout).transpose(0, 2, 1, 3).reshape(B, 2 * S, dout)
    return out


def _reference(x, w1, b1, w2, b2, w3, b3):
    v1 = jnp.einsum("bsd,od->bso", x, w1) + b1
    v2 = x + x
    v3 = jnp.einsum("bsd,od->bso", v2, w2) + b2
    cat = jnp.concatenate([v1, v3], axis=1)
    return jnp.einsum("bsd,od->bso", cat, w3) + b3


if __name__ == "__main__":
    key = jax.random.PRNGKey(0)
    kx, k1, k2, k3, k4, k5, k6 = jax.random.split(key, 7)

    D = 2  # Linear(2, 2) in/out features (fixed by the module)

    # Deterministic parameter init (uniform +/- 1/sqrt(fan_in), torch-like scale)
    bound = 1.0 / (D ** 0.5)
    w1 = jax.random.uniform(k1, (D, D), jnp.float32, -bound, bound)
    b1 = jax.random.uniform(k2, (D,), jnp.float32, -bound, bound)
    w2 = jax.random.uniform(k3, (D, D), jnp.float32, -bound, bound)
    b2 = jax.random.uniform(k4, (D,), jnp.float32, -bound, bound)
    w3 = jax.random.uniform(k5, (D, D), jnp.float32, -bound, bound)
    b3 = jax.random.uniform(k6, (D,), jnp.float32, -bound, bound)

    # Literal spec shape (1, 2, 2) as in the PyTorch module.
    x1 = jax.random.normal(kx, (1, 2, 2), dtype=jnp.float32)
    out1 = jax.block_until_ready(model_forward(x1, w1, b1, w2, b2, w3, b3))
    ref1 = _reference(x1, w1, b1, w2, b2, w3, b3)
    assert out1.shape == (1, 4, D), out1.shape
    assert jnp.allclose(out1, ref1, atol=1e-5, rtol=1e-5)

    # Small batched sanity check (still one grid step).
    xb = jax.random.normal(kx, (8, 2, 2), dtype=jnp.float32)
    outb = jax.block_until_ready(model_forward(xb, w1, b1, w2, b2, w3, b3))
    refb = _reference(xb, w1, b1, w2, b2, w3, b3)
    assert outb.shape == (8, 4, D), outb.shape
    assert jnp.allclose(outb, refb, atol=1e-5, rtol=1e-5)

    print("KERNEL_OK")
</pallas_src>

<mosaic_0001>
module attributes {stable_mosaic.version = 11 : i64} {
  func.func @_fused_kernel(%arg0: i32, %arg1: memref<2x2xf32, #tpu.memory_space<vmem>>, %arg2: memref<2x4xf32, #tpu.memory_space<vmem>>, %arg3: memref<1x4xf32, #tpu.memory_space<vmem>>, %arg4: memref<2x4xf32, #tpu.memory_space<vmem>>) attributes {dimension_semantics = [#tpu.dimension_semantics<arbitrary>], iteration_bounds = array<i64: 1>, scalar_prefetch = 0 : i64, scratch_operands = 0 : i64, tpu.core_type = #tpu.core_type<tc>, window_params = [{pipeline_mode = #tpu.pipeline_mode<synchronous>, transform_indices = @transform_0, window_bounds = array<i64: 2, 2>}, {pipeline_mode = #tpu.pipeline_mode<synchronous>, transform_indices = @transform_1, window_bounds = array<i64: 2, 4>}, {pipeline_mode = #tpu.pipeline_mode<synchronous>, transform_indices = @transform_2, window_bounds = array<i64: 1, 4>}, {pipeline_mode = #tpu.pipeline_mode<synchronous>, transform_indices = @transform_3, window_bounds = array<i64: 2, 4>}]} {
    %c0 = arith.constant 0 : index
    %c0_0 = arith.constant 0 : index
    %0 = vector.load %arg1[%c0, %c0_0] : memref<2x2xf32, #tpu.memory_space<vmem>>, vector<2x2xf32>
    %c0_1 = arith.constant 0 : index
    %c0_2 = arith.constant 0 : index
    %1 = vector.load %arg2[%c0_1, %c0_2] : memref<2x4xf32, #tpu.memory_space<vmem>>, vector<2x4xf32>
    %c0_3 = arith.constant 0 : index
    %c0_4 = arith.constant 0 : index
    %2 = vector.load %arg3[%c0_3, %c0_4] : memref<1x4xf32, #tpu.memory_space<vmem>>, vector<1x4xf32>
    %3 = vector.shape_cast %2 : vector<1x4xf32> to vector<1x4xf32>
    %4 = vector.broadcast %3 : vector<1x4xf32> to vector<2x4xf32>
    %5 = vector.extract_strided_slice %0 {offsets = [0, 0], sizes = [2, 1], strides = [1, 1]} : vector<2x2xf32> to vector<2x1xf32>
    %6 = vector.extract_strided_slice %1 {offsets = [0, 0], sizes = [1, 4], strides = [1, 1]} : vector<2x4xf32> to vector<1x4xf32>
    %7 = vector.broadcast %5 : vector<2x1xf32> to vector<2x4xf32>
    %8 = vector.broadcast %6 : vector<1x4xf32> to vector<2x4xf32>
    %9 = arith.mulf %7, %8 : vector<2x4xf32>
    %10 = arith.addf %4, %9 : vector<2x4xf32>
    %11 = vector.extract_strided_slice %0 {offsets = [0, 1], sizes = [2, 1], strides = [1, 1]} : vector<2x2xf32> to vector<2x1xf32>
    %12 = vector.extract_strided_slice %1 {offsets = [1, 0], sizes = [1, 4], strides = [1, 1]} : vector<2x4xf32> to vector<1x4xf32>
    %13 = vector.broadcast %11 : vector<2x1xf32> to vector<2x4xf32>
    %14 = vector.broadcast %12 : vector<1x4xf32> to vector<2x4xf32>
    %15 = arith.mulf %13, %14 : vector<2x4xf32>
    %16 = arith.addf %10, %15 : vector<2x4xf32>
    %c0_5 = arith.constant 0 : index
    %c0_6 = arith.constant 0 : index
    %17 = vector.load %arg4[%c0_5, %c0_6] : memref<2x4xf32, #tpu.memory_space<vmem>>, vector<2x4xf32>
    tpu.vector_store %arg4[%c0_5, %c0_6], %16 {strides = array<i32>} : memref<2x4xf32, #tpu.memory_space<vmem>>, vector<2x4xf32>,
    return
  }
  func.func @transform_0(%arg0: i32) -> (i32, i32) {
    %c0_i32 = arith.constant 0 : i32
    %c0_i32_0 = arith.constant 0 : i32
    %c0_i32_1 = arith.constant 0 : i32
    return %c0_i32, %c0_i32_0 : i32, i32
  }
  func.func @transform_1(%arg0: i32) -> (i32, i32) {
    %c0_i32 = arith.constant 0 : i32
    %c0_i32_0 = arith.constant 0 : i32
    %c0_i32_1 = arith.constant 0 : i32
    return %c0_i32, %c0_i32_0 : i32, i32
  }
  func.func @transform_2(%arg0: i32) -> (i32, i32) {
    %c0_i32 = arith.constant 0 : i32
    %c0_i32_0 = arith.constant 0 : i32
    %c0_i32_1 = arith.constant 0 : i32
    return %c0_i32, %c0_i32_0 : i32, i32
  }
  func.func @transform_3(%arg0: i32) -> (i32, i32) {
    %c0_i32 = arith.constant 0 : i32
    %c0_i32_0 = arith.constant 0 : i32
    %c0_i32_1 = arith.constant 0 : i32
    return %c0_i32, %c0_i32_0 : i32, i32
  }
}

</mosaic_0001>

<bundles_post_ra>
// kernel: tpu_custom_call.1
= control target key start
LH: loop header
LB: loop body
LE: loop exit
PB: predicated region body
PF: predicated region fallthrough
CT: control target
= control target key end

     0   :  { %8 = vsyncpa [#allocation3], 0  ;;  %s207_s0 = inlined_call_operand.hbm [shape: f32[2,2], index: 0, kind: input, shape index: {}]   ;;  %s208_s1 = inlined_call_operand.hbm [shape: f32[2,4], index: 1, kind: input, shape index: {}]   ;;  %s209_s2 = inlined_call_operand.vmem [shape: f32[1,4], index: 2, kind: input, shape index: {}]   ;;  %s210_s3 = inlined_call_operand.hbm [shape: f32[2,4], index: 3, kind: output, shape index: {}]  }
   0x1   :  { %9 = vsyncpa [#allocation6], 0 }
   0x2   :  { %10 = vsyncpa [#allocation4], 0  ;;  %s16_s14 = sshll.u32 %s207_s0, 4  ;;  %s170_s15 = smov [#allocation2]   ;;  %s17_s14 = int_to_ptr.hbm [resolvable:$true] %s16_s14 }
   0x3   :  { %s18_s16 = sshll.u32 %s170_s15, 4  ;;  %s27_s19 = sshll.u32 %s208_s1, 4  ;;  %s19_s16 = int_to_ptr.vmem [resolvable:$true] %s18_s16  ;;  %s28_s19 = int_to_ptr.hbm [resolvable:$true] %s27_s19 }
   0x4   :  { %21 = dma.hbm_to_vmem [thread:$0]  %s17_s14, 32, %s19_s16, [#allocation3]  }
   0x5   :  { %s171_s20 = smov [#allocation5]  }
   0x6   :  { %s29_s21 = sshll.u32 %s171_s20, 4  ;;  %s30_s21 = int_to_ptr.vmem [resolvable:$true] %s29_s21 }
   0x7   :  { %32 = dma.hbm_to_vmem [thread:$0]  %s28_s19, 32, %s30_s21, [#allocation6]  }
   0x8   :  { %164 = dma.done.wait [#allocation3], 32  }
   0x9   :  { %165 = vsyncadd [#allocation3], 4294967264 }
   0xa   :  { %166 = dma.done.wait [#allocation6], 32  }
   0xb   :  { %167 = vsyncadd [#allocation6], 4294967264  ;;  %v172_v0 = vmov 0   ;;  %v43_v1 = vld [vmem:[#allocation2] sm:$0x3]  ;;  %v173_v2 = vmov 1  }
   0xc   :  { %89 = vset.pattern.permute.xlu0 %v172_v0  ;;  %v44_v3 = vld [vmem:[#allocation5] sm:$0x3]  ;;  %v91_v6 = vld [vmem:[%s209_s2] ss:$0 sm:$0xff]  ;;  %s174_s22 = smov [#allocation7]   ;;  %s73_s26 = sshll.u32 %s210_s3, 4  ;;  %s74_s26 = int_to_ptr.hbm [resolvable:$true] %s73_s26 }
   0xd   :  { %51 = vperm.xlu0 %89, %v43_v1   ;;  %v54_v5 = vperm.slane %v44_v3, 0  ;;  %v61_v8 = vperm.slane %v44_v3, 1  ;;  %s71_s23 = sshll.u32 %s174_s22, 4  ;;  %vm64_vm0 = vcmask 25600   ;;  %s72_s23 = int_to_ptr.vmem [resolvable:$true] %s71_s23 }
  0x15   :  { %90 = vset.pattern.permute.xlu0 %v173_v2 }
  0x16   :  { %58 = vperm.xlu0 %90, %v43_v1  }
  0x7f   :  { %v52_v4 = vpop.permute.xlu0 %51 }
  0x80   :  { %v55_v7 = vmul.f32 %v54_v5, %v52_v4 }
  0x82   :  { %v56_v10 = vadd.f32 %v91_v6, %v55_v7 }
  0x88   :  { %v59_v9 = vpop.permute.xlu0 %58 }
  0x89   :  { %v62_v11 = vmul.f32 %v61_v8, %v59_v9 }
  0x8b   :  { %v63_v12 = vadd.f32 %v62_v11, %v56_v10 }
  0x8d   :  { %65 = vst.msk [vmem:[#allocation7] sm:$0x3] %vm64_vm0, %v63_v12 }
  0x8e   :  { %76 = dma.vmem_to_hbm [thread:$0]  %s72_s23, 32, %s74_s26, [#allocation4]  }
  0x8f   :  { %168 = dma.done.wait [#allocation4], 32  }
  0x90   :  { %169 = vsyncadd [#allocation4], 4294967264 }
  0x91   :  { %81 = vsyncpa [#allocation3], 1 }
  0x92   :  { %82 = vsyncpa [#allocation6], 1 }
  0x93   :  { %83 = vsyncpa [#allocation4], 1 }

</bundles_post_ra>
